<compile_context>
chip_gen: v7x
topology: tpu7x:2x2x1
jax: 0.10.0
libtpu: 0.0.40
codegen_flags: <defaults>
</compile_context>

<pallas_src>
import functools
import math

import jax
import jax.numpy as jnp
from jax.experimental import pallas as pl
from jax.experimental.pallas import tpu as pltpu


def _round_up(a, b):
    return (a + b - 1) // b * b


def _choose_tok(n_tok, cap):
    """Pick tokens-per-tile.

    Prefer a multiple-of-8 divisor of n_tok (no padding -> no post-call output
    slice); among divisors prefer the largest one that still yields >= 2 tiles
    (so a parallel grid axis can feed both v7x TensorCores).  Fall back to
    padding when n_tok is not a multiple of 8.
    Returns (tok, n_pad, n_tiles).
    """
    best = None
    if n_tok % 8 == 0:
        for d in range(8, min(cap, n_tok) + 1, 8):
            if n_tok % d == 0:
                if n_tok // d >= 2:
                    best = d          # largest divisor that keeps >= 2 tiles
                elif best is None:
                    best = d          # single-tile divisor (d == n_tok)
    if best is not None:
        return best, n_tok, n_tok // best
    tok = min(cap, _round_up(n_tok, 8))
    n_pad = _round_up(n_tok, tok)
    return tok, n_pad, n_pad // tok


def _emb_vmem_kernel(ids_ref, table_ref, out_ref, *, vocab, scale):
    """VMEM-resident table: gather TOK rows via a one-hot MXU matmul."""
    ids = ids_ref[...]                                         # (tok, 1) int32
    iota = jax.lax.broadcasted_iota(jnp.int32, (ids.shape[0], vocab), 1)
    onehot = (iota == ids).astype(table_ref.dtype)             # (tok, vocab)
    rows = jnp.dot(onehot, table_ref[...],
                   preferred_element_type=jnp.float32,
                   precision=jax.lax.Precision.HIGHEST)
    out_ref[...] = (rows * scale).astype(out_ref.dtype)


def _emb_gather_kernel(ids_ref, emb_hbm, out_ref, rows_vmem, sems, *, tok, scale):
    """HBM table: cross-tile double-buffered row-DMA gather + dense scaled store."""
    i = pl.program_id(0)
    n = pl.num_programs(0)

    def issue(tile_idx, slot):
        base = tile_idx * tok
        for t in range(tok):                        # unrolled issue loop
            row = ids_ref[base + t]
            pltpu.make_async_copy(
                emb_hbm.at[pl.ds(row, 1)],          # (1, D) row in HBM
                rows_vmem.at[slot, pl.ds(t, 1)],    # (1, D) slot in VMEM
                sems.at[slot],                      # shared per-slot DMA sem
            ).start()

    # Prime the pipeline with the first tile.
    @pl.when(i == 0)
    def _():
        issue(0, 0)

    # Prefetch the next tile's rows BEFORE waiting on the current slot.
    @pl.when(i + 1 < n)
    def _():
        issue(i + 1, (i + 1) % 2)

    # Wait for all `tok` row copies of the current tile.  Only the dst shape
    # and the semaphore matter for a wait; the src here is a placeholder with
    # the same (1, D) shape as the issued copies.
    slot = i % 2
    for t in range(tok):                            # unrolled wait loop
        pltpu.make_async_copy(
            emb_hbm.at[pl.ds(0, 1)],
            rows_vmem.at[slot, pl.ds(t, 1)],
            sems.at[slot],
        ).wait()

    # One dense (TOK, D) scaled store: full sublanes/lanes per vreg.
    out_ref[...] = (rows_vmem[slot] * scale).astype(out_ref.dtype)


def embeddings_forward(x, emb_table, d_model, *, tok_tile=128,
                       use_vmem_table=None,
                       vmem_table_budget_bytes=4 * 1024 * 1024,
                       max_onehot_vocab=2048):
    """x: (B, S) integer ids; emb_table: (vocab, d_model)."""
    B, S = x.shape
    vocab, D = emb_table.shape
    assert D == d_model
    n_tok = B * S

    # Clip ids (PyTorch nn.Embedding would raise on out-of-range ids).
    ids = jnp.clip(x.reshape(n_tok).astype(jnp.int32), 0, vocab - 1)

    tok, n_pad, n_tiles = _choose_tok(n_tok, tok_tile)
    if n_pad != n_tok:
        ids = jnp.pad(ids, (0, n_pad - n_tok))      # pad id 0 (a valid row)

    scale = float(math.sqrt(d_model))
    table_bytes = vocab * D * emb_table.dtype.itemsize
    if use_vmem_table is None:
        use_vmem_table = (table_bytes <= vmem_table_budget_bytes
                          and vocab <= max_onehot_vocab)

    if use_vmem_table:
        out_flat = pl.pallas_call(
            functools.partial(_emb_vmem_kernel, vocab=vocab, scale=scale),
            out_shape=jax.ShapeDtypeStruct((n_pad, D), emb_table.dtype),
            grid=(n_tiles,),
            in_specs=[
                pl.BlockSpec((tok, 1), lambda i: (i, 0)),    # ids column
                pl.BlockSpec((vocab, D), lambda i: (0, 0)),  # resident table
            ],
            out_specs=pl.BlockSpec((tok, D), lambda i: (i, 0)),
            compiler_params=pltpu.CompilerParams(
                dimension_semantics=("parallel",),
            ),
        )(ids.reshape(n_pad, 1), emb_table)
    else:
        grid_spec = pltpu.PrefetchScalarGridSpec(
            num_scalar_prefetch=1,                   # ids -> SMEM
            grid=(n_tiles,),
            in_specs=[pl.BlockSpec(memory_space=pl.ANY)],   # table stays in HBM
            out_specs=pl.BlockSpec((tok, D), lambda i, ids_ref: (i, 0)),
            scratch_shapes=[
                pltpu.VMEM((2, tok, D), emb_table.dtype),   # double buffer
                pltpu.SemaphoreType.DMA((2,)),              # one sem per slot
            ],
        )
        out_flat = pl.pallas_call(
            functools.partial(_emb_gather_kernel, tok=tok, scale=scale),
            out_shape=jax.ShapeDtypeStruct((n_pad, D), emb_table.dtype),
            grid_spec=grid_spec,
            # Cross-grid-step double buffering carries state in scratch, so
            # this axis must stay sequential per core.
            compiler_params=pltpu.CompilerParams(
                dimension_semantics=("arbitrary",),
            ),
        )(ids, emb_table)

    if n_pad != n_tok:
        out_flat = out_flat[:n_tok]
    return out_flat.reshape(B, S, D)


if __name__ == "__main__":
    def ref_fn(xx, table, dm):
        return table[xx] * math.sqrt(dm)

    key = jax.random.PRNGKey(0)

    # 1) Module-default small shapes -> VMEM-resident fast path (2 tiles of 8).
    d_model, vocab, B, S = 128, 16, 2, 8
    key, k1, k2 = jax.random.split(key, 3)
    table = jax.random.normal(k1, (vocab, d_model), dtype=jnp.float32)
    x = jax.random.randint(k2, (B, S), 0, vocab, dtype=jnp.int32)
    out = jax.block_until_ready(embeddings_forward(x, table, d_model))
    assert out.shape == (B, S, d_model)
    assert jnp.allclose(out, ref_fn(x, table, d_model), rtol=1e-5, atol=1e-5)

    # 2) Multi-tile fast path, no padding (n_tok=288 -> 3 tiles of 96).
    d_model, vocab, B, S = 256, 100, 4, 72
    key, k1, k2 = jax.random.split(key, 3)
    table = jax.random.normal(k1, (vocab, d_model), dtype=jnp.float32)
    x = jax.random.randint(k2, (B, S), 0, vocab, dtype=jnp.int32)
    out = jax.block_until_ready(embeddings_forward(x, table, d_model))
    assert out.shape == (B, S, d_model)
    assert jnp.allclose(out, ref_fn(x, table, d_model), rtol=1e-5, atol=1e-5)

    # 3) HBM-gather path (forced): double-buffered gather, 2 tiles of 64.
    d_model, vocab, B, S = 256, 512, 2, 64
    key, k1, k2 = jax.random.split(key, 3)
    table = jax.random.normal(k1, (vocab, d_model), dtype=jnp.float32)
    x = jax.random.randint(k2, (B, S), 0, vocab, dtype=jnp.int32)
    out = jax.block_until_ready(
        embeddings_forward(x, table, d_model, use_vmem_table=False))
    assert out.shape == (B, S, d_model)
    assert jnp.allclose(out, ref_fn(x, table, d_model), rtol=1e-6, atol=1e-6)

    # 4) Padding/slice fallback (n_tok=5 -> one padded tile of 8).
    d_model, vocab, B, S = 128, 16, 1, 5
    key, k1, k2 = jax.random.split(key, 3)
    table = jax.random.normal(k1, (vocab, d_model), dtype=jnp.float32)
    x = jax.random.randint(k2, (B, S), 0, vocab, dtype=jnp.int32)
    out = jax.block_until_ready(embeddings_forward(x, table, d_model))
    assert out.shape == (B, S, d_model)
    assert jnp.allclose(out, ref_fn(x, table, d_model), rtol=1e-5, atol=1e-5)

    print("KERNEL_OK")
</pallas_src>

<mosaic_0001>
module attributes {stable_mosaic.version = 11 : i64} {
  func.func @_emb_vmem_kernel(%arg0: i32, %arg1: memref<8x1xi32, #tpu.memory_space<vmem>>, %arg2: memref<16x128xf32, #tpu.memory_space<vmem>>, %arg3: memref<8x128xf32, #tpu.memory_space<vmem>>) attributes {dimension_semantics = [#tpu.dimension_semantics<parallel>], iteration_bounds = array<i64: 2>, scalar_prefetch = 0 : i64, scratch_operands = 0 : i64, tpu.core_type = #tpu.core_type<tc>, window_params = [{transform_indices = @transform_0, window_bounds = array<i64: 8, 1>}, {pipeline_mode = #tpu.pipeline_mode<synchronous>, transform_indices = @transform_1, window_bounds = array<i64: 16, 128>}, {transform_indices = @transform_2, window_bounds = array<i64: 8, 128>}]} {
    %c0 = arith.constant 0 : index
    %c0_0 = arith.constant 0 : index
    %0 = vector.load %arg1[%c0, %c0_0] : memref<8x1xi32, #tpu.memory_space<vmem>>, vector<8x1xi32>
    %1 = tpu.iota {dimensions = array<i32: 1>} : vector<8x16xi32>
    %2 = vector.broadcast %0 : vector<8x1xi32> to vector<8x16xi32>
    %3 = arith.cmpi eq, %1, %2 : vector<8x16xi32>
    %4 = arith.extui %3 : vector<8x16xi1> to vector<8x16xi32>
    %5 = arith.sitofp %4 : vector<8x16xi32> to vector<8x16xf32>
    %c0_1 = arith.constant 0 : index
    %c0_2 = arith.constant 0 : index
    %6 = vector.load %arg2[%c0_1, %c0_2] : memref<16x128xf32, #tpu.memory_space<vmem>>, vector<16x128xf32>
    %cst = arith.constant dense<0.000000e+00> : vector<8x128xf32>
    %7 = tpu.matmul %5, %6, %cst {dimension_numbers = #tpu.dot_dimension_numbers<[1], [0], [0], [1], [0, 0, 1, 1], [], []>, precision = #tpu.contract_precision<fp32>} : vector<8x16xf32>, vector<16x128xf32>, vector<8x128xf32> -> vector<8x128xf32>
    %cst_3 = arith.constant 11.3137083 : f32
    %8 = vector.broadcast %cst_3 : f32 to vector<8x128xf32>
    %9 = arith.mulf %7, %8 : vector<8x128xf32>
    %c0_4 = arith.constant 0 : index
    %c0_5 = arith.constant 0 : index
    %10 = vector.load %arg3[%c0_4, %c0_5] : memref<8x128xf32, #tpu.memory_space<vmem>>, vector<8x128xf32>
    tpu.vector_store %arg3[%c0_4, %c0_5], %9 {strides = array<i32>} : memref<8x128xf32, #tpu.memory_space<vmem>>, vector<8x128xf32>,
    return
  }
  func.func @transform_0(%arg0: i32) -> (i32, i32) {
    %c0_i32 = arith.constant 0 : i32
    %c0_i32_0 = arith.constant 0 : i32
    return %arg0, %c0_i32 : i32, i32
  }
  func.func @transform_1(%arg0: i32) -> (i32, i32) {
    %c0_i32 = arith.constant 0 : i32
    %c0_i32_0 = arith.constant 0 : i32
    %c0_i32_1 = arith.constant 0 : i32
    return %c0_i32, %c0_i32_0 : i32, i32
  }
  func.func @transform_2(%arg0: i32) -> (i32, i32) {
    %c0_i32 = arith.constant 0 : i32
    %c0_i32_0 = arith.constant 0 : i32
    return %arg0, %c0_i32 : i32, i32
  }
}

</mosaic_0001>

<bundles_post_ra>
// kernel: tpu_custom_call.1
= control target key start
LH: loop header
LB: loop body
LE: loop exit
PB: predicated region body
PF: predicated region fallthrough
CT: control target
= control target key end

     0   :  { %7 = vsyncpa [#allocation3], 0  ;;  %s1033_s0 = inlined_call_operand.vmem [shape: s32[16,1], index: 0, kind: input, shape index: {}]   ;;  %s1034_s1 = inlined_call_operand.vmem [shape: f32[16,128], index: 1, kind: input, shape index: {}]   ;;  %s1035_s2 = inlined_call_operand.hbm [shape: f32[16,128], index: 2, kind: output, shape index: {}]  }
   0x1   :  { %9 = vsyncpa [#allocation3 + $0x1], 0  ;;  %s917_s9 = smov 0   ;;  %s919_s10 = smov 0  }
   0x2   :  { %s921_s11 = smov 0   ;;  %s923_s12 = smov 0  }
   0x3 LB: > { %s938_s13 = sadd.s32 4294967295, %s895_s12   ;;  %s688_s14 = sadd.s32 4294967294, %s895_s12   ;;  %s895_s12 = sphi %s923_s12, %s1041_s12   ;;  %s891_s11 = sphi %s921_s11, %s1040_s11   ;;  %s887_s10 = sphi %s919_s10, %s1039_s10   ;;  %s883_s9 = sphi %s917_s9, %s1038_s9  }
   0x4   : > { %s942_s15 = sadd.s32 1, %s895_s12   ;;  %s69_s16 = sadd.s32 1, %s891_s11 }
   0x5   : > { %s66_s17 = ssub.s32 %s895_s12, %s942_s15  ;;  %p79_p0 = scmp.ne.s32.totalorder %s891_s11, %s887_s10 }
   0x6   : > { %p67_p1 = scmp.eq.s32.totalorder %s66_s17, 0  ;;  %p80_p2 = scmp.eq.s32.totalorder %s938_s13, 1 }
   0x7   : > { %p85_p3 = scmp.ne.s32.totalorder %s887_s10, %s883_s9  ;;  %p86_p4 = scmp.eq.s32.totalorder %s688_s14, 1 }
   0x8   : > { %s953_s18 = scalar_select %p67_p1, %s891_s11, %s69_s16  }
   0x9   : > { %p955_p5 = por %p80_p2, %p79_p0  ;;  %p959_p6 = por %p86_p4, %p85_p3 }
   0xa   : > { %p691_p7 = scmp.ge.s32.totalorder %s895_s12, 1  ;;  %p114_p8 = scmp.lt.s32.totalorder %s895_s12, 3 }
   0xc   : > { %p115_p9 = pnand %p691_p7, %p114_p8 }
   0xd   : > { %p135_p10 = scmp.lt.s32.totalorder (!%p115_p9), %s938_s13, 1  ;;  %v897_v0 = vmov (!%p115_p9), 0   ;;  %v148_v2 = vld [vmem:[%s1034_s1] sm:$0xff] (!%p115_p9)  ;;  %v149_v3 = vld [vmem:[%s1034_s1 + $0x8] sm:$0xff] (!%p115_p9)  ;;  %v898_v7 = vmov (!%p115_p9), 0.0|0.0   ;;  %vm899_vm0 = vmmov (!%p115_p9), 0   ;;  %v140_v20 = vlaneseq (!%p115_p9) }
   0xe   : > { %118 = sbr.rel (%p115_p9) target bundleno = 411 (0x19b), region = 28  ;;  %832 = vset.pattern.permute.xlu0 (!%p115_p9), %v897_v0  ;;  %v155_v4 = vand.u32 (!%p115_p9), 4294901760, %v148_v2  ;;  %v158_v5 = vand.u32 (!%p115_p9), 4294901760, %v149_v3  ;;  %771 = vmatprep.subr.bf16.mxu0 (!%p115_p9), %v898_v7  ;;  %v900_v10 = vmov (!%p115_p9), 0.0   ;;  %vm150_vm1 = vcmask (!%p115_p9), 130048   ;;  %s132_s30 = sand.u32 (!%p115_p9), 1, %s887_s10  }
   0xf   : > { %762 = vmatprep.subr.bf16.mxu1 (!%p115_p9), %v898_v7  ;;  %745 = vmatprep.mubr.msk.f32.mxu0 (!%p115_p9), %vm899_vm0, %v900_v10  ;;  %v141_v21 = vand.u32 (!%p115_p9), 127, %v140_v20  ;;  %s692_s3 = sshll.u32 (!%p115_p9), %s132_s30, 3  ;;  %s699_s4 = sshll.u32 (!%p115_p9), %s938_s13, 7 }
  0x10   : > { %v763_v6 = vpack.c.bf16 (!%p115_p9), %v158_v5, %v155_v4  ;;  %v233_v8 = vsub.f32 (!%p115_p9), %v148_v2, %v155_v4  ;;  %v240_v9 = vsub.f32 (!%p115_p9), %v149_v3, %v158_v5  ;;  %724 = vmatprep.mubr.msk.f32.mxu1 (!%p115_p9), %vm899_vm0, %v900_v10  ;;  %s134_s5 = scalar_lea.vmem (!%p115_p9), [#allocation2], %s692_s3  ;;  %s991_s14 = scalar_lea.hbm (!%p115_p9), %s1035_s2, %s699_s4 }
  0x11   : > { %s629_s6 = sshll.u32 (!%p115_p9), %s134_s5, 4  ;;  %s616_s16 = scalar_lea.sflag (!%p115_p9), [#allocation3], %s132_s30  ;;  %s993_s6 = int_to_ptr.vmem [resolvable:$true] %s629_s6 }
  0x12   : > { %773 = vmatpush3.bf16.msra.mxu0 (!%p115_p9), %v763_v6  ;;  %764 = vmatpush3.bf16.msra.mxu1 (!%p115_p9), %v763_v6  ;;  %v234_v11 = vand.u32 (!%p115_p9), 4294901760, %v233_v8  ;;  %v241_v12 = vand.u32 (!%p115_p9), 4294901760, %v240_v9  ;;  %v769_v19 = vpack.c.bf16 (!%p115_p9), %v240_v9, %v233_v8  ;;  %s833_s17 = scalar_lea.vmem (!%p115_p9), %s993_s6, 128 }
  0x13   : > { %765 = vmatprep.subr.bf16.mxu1 (!%p115_p9), %v898_v7  ;;  %774 = vmatprep.subr.bf16.mxu0 (!%p115_p9), %v898_v7  ;;  %p834_p11 = scmp.ne.s32.totalorder (!%p115_p9), %s993_s6, %s833_s17 }
  0x14   : > { %v235_v13 = vsub.f32 (!%p115_p9), %v233_v8, %v234_v11  ;;  %v242_v14 = vsub.f32 (!%p115_p9), %v240_v9, %v241_v12  ;;  %v775_v15 = vpack.c.bf16 (!%p115_p9), %v241_v12, %v234_v11 }
  0x15   : > { %s136_s21 = scalar_select %p135_p10, %s938_s13, 1 }
  0x16   : > { %v236_v16 = vand.u32 4294901760, %v235_v13  ;;  %v243_v17 = vand.u32 4294901760, %v242_v14  ;;  %p835_p12 = pnand %p834_p11, %p955_p5  ;;  %s901_s13 = smov [#allocation2]  }
  0x17   : > { %s693_s22 = sshll.u32 %s136_s21, 3  ;;  %s837_s21 = sshll.u32 %s901_s13, 4  ;;  %s838_s21 = int_to_ptr.vmem [resolvable:$false] %s837_s21 }
  0x18   : > { %s138_s25 = scalar_lea.vmem %s1033_s0, %s693_s22  ;;  %v766_v18 = vpack.c.bf16 %v243_v17, %v236_v16  ;;  %p836_p13 = pneg %p835_p12 }
  0x19   : > { %v139_v1 = vld [vmem:[%s138_s25] sm:$0xff]  ;;  %s839_s22 = scalar_lea.vmem %s838_s21, 256  ;;  %p840_p0 = scmp.lt.s32.totalorder %s993_s6, %s838_s21 }
  0x1a   : > { %143 = vperm.xlu0 %832, %v139_v1   ;;  %p841_p1 = scmp.lt.s32.totalorder %s839_s22, %s833_s17 }
  0x1c   : > { %p842_p2 = por %p841_p1, %p840_p0 }
  0x1e   : > { %p843_p3 = pnand %p842_p2, %p836_p13 }
  0x99   : > { %v144_v22 = vpop.permute.xlu0 %143 }
  0x9a   : > { %vm145_vm2 = vcmp.eq.s32.totalorder %v141_v21, %v144_v22 }
  0x9b   : > { %v694_v23 = vsel %vm145_vm2, 1.0, %v900_v10 }
  0x9c   : > { %v152_v24 = vsel %vm150_vm1, %v694_v23, 0 }
  0x9d   : > { %v222_v25 = vsub.f32 %v152_v24, %v152_v24 }
  0x9f   : > { %v223_v26 = vand.u32 4294901760, %v222_v25 }
  0xa1   : > { %746 = vmatmul.mubr.f32.vlgmr.msra.gmra.mrb[0].mxu0 %v223_v26  ;;  %v224_v27 = vsub.f32 %v222_v25, %v223_v26 }
  0xa2   : > { %776 = vmatpush3.bf16.msra.mxu0 %v775_v15  ;;  %752 = vmatprep.mubr.msk.f32.mxu0 %vm899_vm0, %v900_v10 }
  0xa3   : > { %v225_v28 = vand.u32 4294901760, %v224_v27  ;;  %777 = vmatprep.subr.bf16.mxu0 %v898_v7 }
  0xa5   : > { %725 = vmatmul.mubr.f32.vlgmr.msra.gmra.mrb[0].mxu1 %v225_v28 }
  0xa6   : > { %767 = vmatpush3.bf16.msra.mxu1 %v766_v18  ;;  %731 = vmatprep.mubr.msk.f32.mxu1 %vm899_vm0, %v900_v10 }
  0xa7   : > { %768 = vmatprep.subr.bf16.mxu1 %v898_v7 }
  0xa9   : > { %753 = vmatmul.mubr.msk.f32.vlgmr.msra.gmra.mrb[0].mxu0 %vm150_vm1, %v694_v23 }
  0xaa   : > { %779 = vmatpush3.bf16.msra.mxu0 %v763_v6  ;;  %759 = vmatprep.mubr.msk.f32.mxu0 %vm899_vm0, %v900_v10 }
  0xad   : > { %732 = vmatmul.mubr.msk.f32.vlgmr.msra.gmra.mrb[0].mxu1 %vm150_vm1, %v694_v23 }
  0xae   : > { %770 = vmatpush3.bf16.msra.mxu1 %v769_v19  ;;  %738 = vmatprep.mubr.msk.f32.mxu1 %vm899_vm0, %v900_v10 }
  0xb1   : > { %760 = vmatmul.mubr.msk.f32.vlgmr.msra.gmra.mrb[0].mxu0 %vm150_vm1, %v694_v23 }
  0xb5   : > { %739 = vmatmul.mubr.f32.vlgmr.msra.gmra.mrb[0].mxu1 %v222_v25 }
 0x184   : > { %v609_v29 = vpop.f32.mrb[0].mxu0 }
 0x185   : > { %v761_v30 = vpop.f32.mrb[1].mxu0 }
 0x188   : > { %v384_v31 = vpop.f32.mrb[0].mxu1 }
 0x189   : > { %v780_v32 = vadd.f32 %v609_v29, %v384_v31  ;;  %v740_v33 = vpop.f32.mrb[1].mxu1 }
 0x18b   : > { %v613_v34 = vmul.f32 11.313708, %v780_v32 }
 0x18d   : > { %614 = vst [vmem:[%s134_s5] sm:$0xff] %v613_v34 }
 0x18e   : > { %846 = shalt.err (!%p843_p3)
}
 0x18f   : > { %s847_s23 = scalar_lea.hbm %s991_s14, 128  ;;  %s851_s26 = scalar_lea.hbm %s1035_s2, 256 }
 0x190   : > { %p848_p4 = scmp.ne.s32.totalorder %s991_s14, %s847_s23  ;;  %p852_p9 = scmp.lt.u32.totalorder %s991_s14, %s1035_s2 }
 0x191   : > { %p853_p10 = scmp.lt.u32.totalorder %s851_s26, %s847_s23  ;;  %p855_p12 = scmp.lt.u32.totalorder %s847_s23, %s991_s14 }
 0x192   : > { %p849_p7 = pnand %p848_p4, %p955_p5 }
 0x193   : > { %p854_p11 = por %p853_p10, %p852_p9 }
 0x194   : > { %p850_p8 = pneg %p849_p7 }
 0x195   : > { %p856_p13 = por %p855_p12, %p854_p11 }
 0x197   : > { %p857_p0 = pnand %p856_p13, %p850_p8 }
 0x199   : > { %860 = shalt.err (!%p857_p0)
}
 0x19a   : > { %789 = dma.vmem_to_hbm [thread:$0]  (%p955_p5), %s993_s6, 128, %s991_s14, %s616_s16  }
 0x19b PF: > { %p795_p1 = scmp.ge.s32.totalorder %s895_s12, 2  ;;  %s641_s29 = sand.u32 1, %s883_s9  }
 0x19c   : > { %s642_s30 = scalar_lea.sflag [#allocation3], %s641_s29 }
 0x19d   : > { %p792_p2 = pnand %p795_p1, %p959_p6 }
 0x19f   : > { %878 = dma.done.wait (!%p792_p2), %s642_s30, 128  }
 0x1a0   : > { %880 = vsyncadd (!%p792_p2), %s642_s30, 4294967168  ;;  %p12_p3 = scmp.ge.s32.totalorder %s942_s15, 4   ;;  %s1038_s9 = smov %s887_s10 }
 0x1a1   : > { %s1039_s10 = smov %s891_s11  ;;  %s1040_s11 = smov %s953_s18 }
 0x1a2   : > { %s1041_s12 = smov %s942_s15  ;;  %14 = sbr.rel (!%p12_p3) target bundleno = 3 (0x3), region = 63 }
 0x1a9   :  { %647 = vsyncpa [#allocation3], 1 }
 0x1aa   :  { %649 = vsyncpa [#allocation3 + $0x1], 1 }

</bundles_post_ra>
